<compile_context>
chip_gen: v7x
topology: tpu7x:2x2x1
jax: 0.10.0
libtpu: 0.0.40
codegen_flags: <defaults>
</compile_context>

<pallas_src>
import functools

import jax
import jax.numpy as jnp
from jax.experimental import pallas as pl
from jax.experimental.pallas import tpu as pltpu


def _critic_kernel(x_ref, w1_ref, b1_ref, w2_ref, out_ref, acc_ref, *,
                   steps_per_split, tm, n_tokens, total_rows, inv_n):
    # x_ref:  (TM, D)  flattened-token tile (tail rows of last block undefined)
    # w1_ref: (D, H)   b1_ref: (1, H)   w2_ref: (H, V)
    # out_ref:(B, V)   per-split partial projection (b2 added in wrapper)
    # acc_ref:(B, H)   running 1/N-weighted token sum of hidden activations
    p = pl.program_id(0)
    j = pl.program_id(1)

    @pl.when(j == 0)
    def _():
        acc_ref[...] = jnp.zeros_like(acc_ref)

    # Linear(fea_dim -> 16) + ReLU as one flattened 2-D MXU matmul.
    h = jnp.dot(x_ref[...], w1_ref[...], preferred_element_type=jnp.float32)
    h = jnp.maximum(h + b1_ref[...], 0.0)                         # (TM, H)

    # Global flattened-row offset this tile was *meant* to cover (the x block
    # index is clamped in the index_map; out-of-range tiles mask to zero here).
    base = (p * steps_per_split + j) * tm

    # Mask rows past the real end of x: required because the tail of the last
    # block is undefined in VMEM and 0 * NaN = NaN in the accumulate below.
    row_ids = base + jax.lax.broadcasted_iota(jnp.int32, (h.shape[0], 1), 0)
    h = jnp.where(row_ids < total_rows, h, 0.0)

    # Per-batch 1/N averaging selector generated on the fly (never touches
    # HBM): sel[b, t] = 1/N iff global row (base + t) belongs to batch b.
    b_dim = acc_ref.shape[0]
    rb = jax.lax.broadcasted_iota(jnp.int32, (b_dim, h.shape[0]), 0)
    cols = base + jax.lax.broadcasted_iota(jnp.int32, (b_dim, h.shape[0]), 1)
    sel = jnp.where((cols >= rb * n_tokens) & (cols < (rb + 1) * n_tokens),
                    jnp.float32(inv_n), jnp.float32(0.0))          # (B, TM)

    # Token mean on the MXU: (B, TM) @ (TM, H) -> (B, H).
    acc_ref[...] += jnp.dot(sel, h, preferred_element_type=jnp.float32)

    @pl.when(j == pl.num_programs(1) - 1)
    def _():
        # Second linear applied after the mean (linearity). Bias b2 and the
        # cross-split sum are added once in the wrapper.
        out_ref[...] = jnp.dot(acc_ref[...], w2_ref[...],
                               preferred_element_type=jnp.float32)


def critic_forward(x, w1, b1, w2, b2, *, tm=4096):
    """x: (B, N, D) f32 -> (baseline_val.detach().squeeze(), baseline_val.squeeze())."""
    B, N, D = x.shape
    H = w1.shape[1]
    V = w2.shape[1]
    M = B * N

    x2d = x.reshape(M, D)  # merging contiguous leading dims: no copy

    # Token-tile size: as large as allowed (amortizes ~0.35us/step overhead);
    # no padding of x — the partial tail block is masked inside the kernel.
    tm = max(8, (tm // 8) * 8)
    TM = M if M <= tm else tm            # TM == M is allowed even if M % 8 != 0
    steps = pl.cdiv(M, TM)

    # Leading "parallel" axis: split the token range in two so both v7x
    # TensorCores get work; harmless extra outer iteration on v5e/v6e.
    P = 2 if steps >= 2 else 1
    spp = pl.cdiv(steps, P)

    def x_index(p_idx, j_idx):
        t = p_idx * spp + j_idx
        # Clamp the (at most one) overflow tile of the last split; its rows
        # are fully masked in-kernel so the duplicated read is inert.
        return (jnp.minimum(t, steps - 1), 0)

    kernel = functools.partial(
        _critic_kernel,
        steps_per_split=spp, tm=TM, n_tokens=N, total_rows=M, inv_n=1.0 / N)

    partials = pl.pallas_call(
        kernel,
        out_shape=jax.ShapeDtypeStruct((P, B, V), jnp.float32),
        grid_spec=pltpu.PrefetchScalarGridSpec(
            num_scalar_prefetch=0,
            grid=(P, spp),
            in_specs=[
                pl.BlockSpec((TM, D), x_index),              # x token tile
                pl.BlockSpec((D, H), lambda p, j: (0, 0)),   # w1 (resident)
                pl.BlockSpec((1, H), lambda p, j: (0, 0)),   # b1
                pl.BlockSpec((H, V), lambda p, j: (0, 0)),   # w2
            ],
            out_specs=pl.BlockSpec((None, B, V), lambda p, j: (p, 0, 0)),
            scratch_shapes=[pltpu.VMEM((B, H), jnp.float32)],
        ),
        compiler_params=pltpu.CompilerParams(
            dimension_semantics=("parallel", "arbitrary"),
            vmem_limit_bytes=32 * 1024 * 1024),
    )(x2d, w1, b1.reshape(1, H), w2)

    # Tiny (P,B,V) combine + bias add (stays out of the mem-bound kernel).
    baseline_val = partials.sum(axis=0) + b2                  # (B, V)
    bv = jnp.squeeze(baseline_val)
    # .detach() <-> stop_gradient (identical values in the forward pass)
    return jax.lax.stop_gradient(bv), bv


def _ref_forward(x, w1, b1, w2, b2):
    h = jnp.maximum(x @ w1 + b1, 0.0)
    y = h @ w2 + b2
    return jnp.squeeze(jnp.mean(y, axis=-2))


if __name__ == "__main__":
    def run_case(B, N, D, H, V, tm):
        key = jax.random.PRNGKey(0)
        kx, k1, k2, k3, k4 = jax.random.split(key, 5)
        x = jax.random.normal(kx, (B, N, D), dtype=jnp.float32)
        w1 = jax.random.normal(k1, (D, H), dtype=jnp.float32) * (1.0 / jnp.sqrt(D))
        b1 = jax.random.normal(k2, (H,), dtype=jnp.float32) * 0.01
        w2 = jax.random.normal(k3, (H, V), dtype=jnp.float32) * (1.0 / jnp.sqrt(H))
        b2 = jax.random.normal(k4, (V,), dtype=jnp.float32) * 0.01

        detached, val = jax.jit(functools.partial(critic_forward, tm=tm))(
            x, w1, b1, w2, b2)
        jax.block_until_ready((detached, val))

        ref = _ref_forward(x, w1, b1, w2, b2)
        assert val.shape == ref.shape == (B,)
        assert jnp.allclose(val, ref, atol=1e-4, rtol=1e-4)
        assert jnp.allclose(detached, val)

    # Small shapes consistent with the module: opts.fea_dim=32, opts.value_dim=1.
    run_case(B=2, N=8, D=32, H=16, V=1, tm=4096)
    # Multi-tile path: grid=(2, spp) with a partial tail block, exercising the
    # in-kernel selector, tail masking and the parallel split (tm shrunk only
    # to force several grid steps at small test size).
    run_case(B=3, N=167, D=32, H=16, V=1, tm=128)

    print("KERNEL_OK")
</pallas_src>

<mosaic_0001>
module attributes {stable_mosaic.version = 11 : i64} {
  func.func @_critic_kernel(%arg0: i32, %arg1: i32, %arg2: memref<16x32xf32, #tpu.memory_space<vmem>>, %arg3: memref<32x16xf32, #tpu.memory_space<vmem>>, %arg4: memref<1x16xf32, #tpu.memory_space<vmem>>, %arg5: memref<16x1xf32, #tpu.memory_space<vmem>>, %arg6: memref<1x2x1xf32, #tpu.memory_space<vmem>>, %arg7: memref<2x16xf32, #tpu.memory_space<vmem>>) attributes {dimension_semantics = [#tpu.dimension_semantics<parallel>, #tpu.dimension_semantics<arbitrary>], iteration_bounds = array<i64: 1, 1>, scalar_prefetch = 0 : i64, scratch_operands = 1 : i64, tpu.core_type = #tpu.core_type<tc>, window_params = [{transform_indices = @transform_0, window_bounds = array<i64: 16, 32>}, {pipeline_mode = #tpu.pipeline_mode<synchronous>, transform_indices = @transform_1, window_bounds = array<i64: 32, 16>}, {pipeline_mode = #tpu.pipeline_mode<synchronous>, transform_indices = @transform_2, window_bounds = array<i64: 1, 16>}, {pipeline_mode = #tpu.pipeline_mode<synchronous>, transform_indices = @transform_3, window_bounds = array<i64: 16, 1>}, {transform_indices = @transform_4, window_bounds = array<i64: 1, 2, 1>}]} {
    %c0_i32 = arith.constant 0 : i32
    %0 = arith.cmpi eq, %arg1, %c0_i32 : i32
    %1 = arith.extui %0 : i1 to i32
    %c0_i32_0 = arith.constant 0 : i32
    %2 = arith.cmpi ne, %1, %c0_i32_0 : i32
    scf.if %2 {
      %cst_20 = arith.constant 0.000000e+00 : f32
      %46 = vector.broadcast %cst_20 : f32 to vector<2x16xf32>
      %c0_21 = arith.constant 0 : index
      %c0_22 = arith.constant 0 : index
      %47 = vector.load %arg7[%c0_21, %c0_22] : memref<2x16xf32, #tpu.memory_space<vmem>>, vector<2x16xf32>
      tpu.vector_store %arg7[%c0_21, %c0_22], %46 {strides = array<i32>} : memref<2x16xf32, #tpu.memory_space<vmem>>, vector<2x16xf32>,
    } else {
    }
    %c0 = arith.constant 0 : index
    %c0_1 = arith.constant 0 : index
    %3 = vector.load %arg2[%c0, %c0_1] : memref<16x32xf32, #tpu.memory_space<vmem>>, vector<16x32xf32>
    %c0_2 = arith.constant 0 : index
    %c0_3 = arith.constant 0 : index
    %4 = vector.load %arg3[%c0_2, %c0_3] : memref<32x16xf32, #tpu.memory_space<vmem>>, vector<32x16xf32>
    %cst = arith.constant dense<0.000000e+00> : vector<16x16xf32>
    %5 = tpu.matmul %3, %4, %cst {dimension_numbers = #tpu.dot_dimension_numbers<[1], [0], [0], [1], [0, 0, 1, 1], [], []>} : vector<16x32xf32>, vector<32x16xf32>, vector<16x16xf32> -> vector<16x16xf32>
    %c0_4 = arith.constant 0 : index
    %c0_5 = arith.constant 0 : index
    %6 = vector.load %arg4[%c0_4, %c0_5] : memref<1x16xf32, #tpu.memory_space<vmem>>, vector<1x16xf32>
    %7 = vector.broadcast %6 : vector<1x16xf32> to vector<16x16xf32>
    %8 = arith.addf %5, %7 : vector<16x16xf32>
    %cst_6 = arith.constant 0.000000e+00 : f32
    %9 = vector.broadcast %cst_6 : f32 to vector<16x16xf32>
    %10 = arith.maximumf %8, %9 : vector<16x16xf32>
    %c1_i32 = arith.constant 1 : i32
    %11 = arith.muli %arg0, %c1_i32 : i32
    %12 = arith.addi %11, %arg1 : i32
    %c16_i32 = arith.constant 16 : i32
    %13 = arith.muli %12, %c16_i32 : i32
    %14 = tpu.iota {dimensions = array<i32: 0>} : vector<16x1xi32>
    %15 = vector.broadcast %13 : i32 to vector<16x1xi32>
    %16 = arith.addi %15, %14 : vector<16x1xi32>
    %c16_i32_7 = arith.constant 16 : i32
    %17 = vector.broadcast %c16_i32_7 : i32 to vector<16x1xi32>
    %18 = arith.cmpi slt, %16, %17 : vector<16x1xi32>
    %cst_8 = arith.constant 0.000000e+00 : f32
    %19 = vector.shape_cast %18 : vector<16x1xi1> to vector<16x1xi1>
    %20 = vector.broadcast %19 : vector<16x1xi1> to vector<16x16xi1>
    %21 = vector.broadcast %cst_8 : f32 to vector<16x16xf32>
    %22 = arith.select %20, %10, %21 : vector<16x16xi1>, vector<16x16xf32>
    %23 = tpu.iota {dimensions = array<i32: 0>} : vector<2x16xi32>
    %24 = tpu.iota {dimensions = array<i32: 1>} : vector<2x16xi32>
    %25 = vector.broadcast %13 : i32 to vector<2x16xi32>
    %26 = arith.addi %25, %24 : vector<2x16xi32>
    %c8_i32 = arith.constant 8 : i32
    %27 = vector.broadcast %c8_i32 : i32 to vector<2x16xi32>
    %28 = arith.muli %23, %27 : vector<2x16xi32>
    %29 = arith.cmpi sge, %26, %28 : vector<2x16xi32>
    %c1_i32_9 = arith.constant 1 : i32
    %30 = vector.broadcast %c1_i32_9 : i32 to vector<2x16xi32>
    %31 = arith.addi %23, %30 : vector<2x16xi32>
    %c8_i32_10 = arith.constant 8 : i32
    %32 = vector.broadcast %c8_i32_10 : i32 to vector<2x16xi32>
    %33 = arith.muli %31, %32 : vector<2x16xi32>
    %34 = arith.cmpi slt, %26, %33 : vector<2x16xi32>
    %35 = arith.andi %29, %34 : vector<2x16xi1>
    %cst_11 = arith.constant 1.250000e-01 : f32
    %cst_12 = arith.constant 0.000000e+00 : f32
    %36 = vector.broadcast %cst_11 : f32 to vector<2x16xf32>
    %37 = vector.broadcast %cst_12 : f32 to vector<2x16xf32>
    %38 = arith.select %35, %36, %37 : vector<2x16xi1>, vector<2x16xf32>
    %c0_13 = arith.constant 0 : index
    %c0_14 = arith.constant 0 : index
    %39 = vector.load %arg7[%c0_13, %c0_14] : memref<2x16xf32, #tpu.memory_space<vmem>>, vector<2x16xf32>
    %cst_15 = arith.constant dense<0.000000e+00> : vector<2x16xf32>
    %40 = tpu.matmul %38, %22, %cst_15 {dimension_numbers = #tpu.dot_dimension_numbers<[1], [0], [0], [1], [0, 0, 1, 1], [], []>} : vector<2x16xf32>, vector<16x16xf32>, vector<2x16xf32> -> vector<2x16xf32>
    %41 = arith.addf %39, %40 : vector<2x16xf32>
    %c0_16 = arith.constant 0 : index
    %c0_17 = arith.constant 0 : index
    %42 = vector.load %arg7[%c0_16, %c0_17] : memref<2x16xf32, #tpu.memory_space<vmem>>, vector<2x16xf32>
    tpu.vector_store %arg7[%c0_16, %c0_17], %41 {strides = array<i32>} : memref<2x16xf32, #tpu.memory_space<vmem>>, vector<2x16xf32>,
    %c0_i32_18 = arith.constant 0 : i32
    %43 = arith.cmpi eq, %arg1, %c0_i32_18 : i32
    %44 = arith.extui %43 : i1 to i32
    %c0_i32_19 = arith.constant 0 : i32
    %45 = arith.cmpi ne, %44, %c0_i32_19 : i32
    scf.if %45 {
      %c0_20 = arith.constant 0 : index
      %c0_21 = arith.constant 0 : index
      %46 = vector.load %arg7[%c0_20, %c0_21] : memref<2x16xf32, #tpu.memory_space<vmem>>, vector<2x16xf32>
      %c0_22 = arith.constant 0 : index
      %c0_23 = arith.constant 0 : index
      %47 = vector.load %arg5[%c0_22, %c0_23] : memref<16x1xf32, #tpu.memory_space<vmem>>, vector<16x1xf32>
      %cst_24 = arith.constant dense<0.000000e+00> : vector<2x1xf32>
      %48 = tpu.matmul %46, %47, %cst_24 {dimension_numbers = #tpu.dot_dimension_numbers<[1], [0], [0], [1], [0, 0, 1, 1], [], []>} : vector<2x16xf32>, vector<16x1xf32>, vector<2x1xf32> -> vector<2x1xf32>
      %c0_25 = arith.constant 0 : index
      %c0_26 = arith.constant 0 : index
      %c0_27 = arith.constant 0 : index
      %49 = vector.load %arg6[%c0_25, %c0_26, %c0_27] : memref<1x2x1xf32, #tpu.memory_space<vmem>>, vector<1x2x1xf32>
      %50 = vector.shape_cast %49 : vector<1x2x1xf32> to vector<2x1xf32>
      %51 = vector.shape_cast %48 : vector<2x1xf32> to vector<1x2x1xf32>
      tpu.vector_store %arg6[%c0_25, %c0_26, %c0_27], %51 {strides = array<i32>} : memref<1x2x1xf32, #tpu.memory_space<vmem>>, vector<1x2x1xf32>,
    } else {
    }
    return
  }
  func.func @transform_0(%arg0: i32, %arg1: i32) -> (i32, i32) {
    %c1_i32 = arith.constant 1 : i32
    %0 = arith.muli %arg0, %c1_i32 : i32
    %1 = arith.addi %0, %arg1 : i32
    %c0_i32 = arith.constant 0 : i32
    %2 = arith.minsi %1, %c0_i32 : i32
    %c0_i32_0 = arith.constant 0 : i32
    %c0_i32_1 = arith.constant 0 : i32
    return %2, %c0_i32_0 : i32, i32
  }
  func.func @transform_1(%arg0: i32, %arg1: i32) -> (i32, i32) {
    %c0_i32 = arith.constant 0 : i32
    %c0_i32_0 = arith.constant 0 : i32
    %c0_i32_1 = arith.constant 0 : i32
    return %c0_i32, %c0_i32_0 : i32, i32
  }
  func.func @transform_2(%arg0: i32, %arg1: i32) -> (i32, i32) {
    %c0_i32 = arith.constant 0 : i32
    %c0_i32_0 = arith.constant 0 : i32
    %c0_i32_1 = arith.constant 0 : i32
    return %c0_i32, %c0_i32_0 : i32, i32
  }
  func.func @transform_3(%arg0: i32, %arg1: i32) -> (i32, i32) {
    %c0_i32 = arith.constant 0 : i32
    %c0_i32_0 = arith.constant 0 : i32
    %c0_i32_1 = arith.constant 0 : i32
    return %c0_i32, %c0_i32_0 : i32, i32
  }
  func.func @transform_4(%arg0: i32, %arg1: i32) -> (i32, i32, i32) {
    %c0_i32 = arith.constant 0 : i32
    %c0_i32_0 = arith.constant 0 : i32
    %c0_i32_1 = arith.constant 0 : i32
    return %arg0, %c0_i32, %c0_i32_0 : i32, i32, i32
  }
}

</mosaic_0001>

<bundles_post_ra>
// kernel: critic_forward.1
= control target key start
LH: loop header
LB: loop body
LE: loop exit
PB: predicated region body
PF: predicated region fallthrough
CT: control target
= control target key end

     0   :  { %vm68_vm0 = vcmask 261120   ;;  %v406_v8 = vmov 0.0|0.0   ;;  %vm53_vm1 = vcmask 123904   ;;  %v407_v9 = vmov 0.0   ;;  %s468_s1 = inlined_call_operand.vmem [shape: f32[32,16], index: 1, kind: input, shape index: {}]   ;;  %s469_s0 = inlined_call_operand.vmem [shape: f32[16,32], index: 0, kind: input, shape index: {}]   ;;  %s470_s2 = inlined_call_operand.vmem [shape: f32[1,16], index: 2, kind: input, shape index: {}]   ;;  %s471_s3 = inlined_call_operand.vmem [shape: f32[16,1], index: 3, kind: input, shape index: {}]   ;;  %s472_s4 = inlined_call_operand.vmem [shape: f32[1,2,1], index: 4, kind: output, shape index: {}]  }
   0x1   :  { %v57_v0 = vld [vmem:[%s468_s1] sm:$0xff]  ;;  %v58_v1 = vld [vmem:[%s468_s1 + $0x8] sm:$0xff]  ;;  %v59_v2 = vld [vmem:[%s468_s1 + $0x10] sm:$0xff]  ;;  %397 = vmatprep.subr.bf16.mxu1 %v406_v8  ;;  %54 = vst.msk [vmem:[#allocation2] sm:$0x3] %vm53_vm1, %v407_v9  ;;  %vm408_vm2 = vmmov 0   ;;  %v154_v10 = vlaneseq }
   0x2   :  { %v389_v3 = vpack.c.bf16 %v58_v1, %v57_v0  ;;  %v60_v4 = vld [vmem:[%s468_s1 + $0x18] sm:$0xff]  ;;  %v55_v5 = vld [vmem:[%s469_s0] sm:$0xff]  ;;  %v56_v7 = vld [vmem:[%s469_s0 + $0x8] sm:$0xff]  ;;  %379 = vmatprep.mubr.msk.f32.mxu1 %vm408_vm2, %v407_v9  ;;  %vm179_vm6 = vcmask 130048   ;;  %vm335_vm7 = vcmask 1024  }
   0x3   :  { %v393_v6 = vpack.c.bf16 %v60_v4, %v59_v2  ;;  %372 = vmatprep.mubr.msk.f32.mxu0 %vm68_vm0, %v55_v5  ;;  %v155_v11 = vshrl.u32 %v154_v10, 7  ;;  %v347_v13 = vld [vmem:[%s470_s2] ss:$0 sm:$0xff]  ;;  %v169_v14 = vand.u32 127, %v154_v10  ;;  %v261_v26 = vld [vmem:[%s471_s3 + $0x8] sm:$0xff] }
   0x4   :  { %390 = vmatprep.subr.bf16.mxu0 %v389_v3  ;;  %v260_v25 = vld [vmem:[%s471_s3] sm:$0xff] }
   0x5   :  { %392 = vmatpush3.bf16.msra.mxu0 %v389_v3  ;;  %v173_v12 = vadd.s32 1, %v155_v11  ;;  %v171_v15 = vmul.u32 8, %v155_v11  ;;  %v401_v27 = vpack.c.bf16 %v261_v26, %v260_v25 }
   0x6   :  { %394 = vmatprep.subr.bf16.mxu0 %v393_v6 }
   0x7   :  { %v174_v16 = vmul.u32 8, %v173_v12  ;;  %vm172_vm3 = vcmp.ge.s32.totalorder %v169_v14, %v171_v15 }
   0x8   :  { %v178_v28 = vld [vmem:[#allocation2] sm:$0x3] }
   0x9   :  { %396 = vmatpush3.bf16.msra.mxu0 %v393_v6  ;;  %vm175_vm4 = vcmp.lt.s32.totalorder %v169_v14, %v174_v16 }
   0xa   :  { %vm176_vm5 = vmand %vm172_vm3, %vm175_vm4 }
   0xb   :  { %v177_v24 = vsel %vm176_vm5, 0.125, %v407_v9 }
   0xc   :  { %373 = vmatmul.mubr.msk.f32.vlgmr.msra.gmra.mrb[0].mxu0 %vm68_vm0, %v56_v7 }
  0xdf   :  { %v374_v17 = vpop.f32.mrb[0].mxu0 }
  0xe0   :  { %v147_v18 = vadd.f32 %v374_v17, %v347_v13  ;;  %v141_v19 = vpop.f32.mrb[1].mxu0 }
  0xe1   :  { %v142_v20 = vadd.f32 %v347_v13, %v141_v19 }
  0xe2   :  { %v151_v21 = vmax.f32 %v147_v18, 0.0 }
  0xe3   :  { %v150_v22 = vmax.f32 %v142_v20, 0.0 }
  0xe5   :  { %v398_v23 = vpack.c.bf16 %v151_v21, %v150_v22 }
  0xe7   :  { %399 = vmatpush3.bf16.msra.mxu1 %v398_v23 }
  0xe8   :  { %400 = vmatprep.subr.bf16.mxu1 %v406_v8 }
  0xea   :  { %380 = vmatmul.mubr.msk.f32.vlgmr.msra.gmra.mrb[0].mxu1 %vm179_vm6, %v177_v24 }
  0xeb   :  { %386 = vmatprep.mubr.msk.f32.mxu1 %vm408_vm2, %v407_v9  ;;  %402 = vmatpush3.bf16.msra.mxu1 %v401_v27 }
 0x1bd   :  { %v249_v29 = vpop.f32.mrb[0].mxu1 }
 0x1be   :  { %v253_v30 = vadd.f32 %v249_v29, %v178_v28  ;;  %v381_v31 = vpop.f32.mrb[1].mxu1 }
 0x1c0   :  { %255 = vst.msk [vmem:[#allocation2] sm:$0x3] %vm53_vm1, %v253_v30 }
 0x1c7   :  { %v259_v32 = vld [vmem:[#allocation2] sm:$0x3] }
 0x1c8   :  { %387 = vmatmul.mubr.msk.f32.vlgmr.msra.gmra.mrb[2].mxu1 %vm179_vm6, %v259_v32 }
 0x29b   :  { %v331_v33 = vpop.f32.mrb[2].mxu1 }
 0x29c   :  { %336 = vst.msk [vmem:[%s472_s4] sm:$0x3] %vm335_vm7, %v331_v33  ;;  %v388_v34 = vpop.f32.mrb[3].mxu1 }

</bundles_post_ra>
